<compile_context>
chip_gen: v6e
topology: v6e:2x2x1
jax: 0.10.0
libtpu: 0.0.40
codegen_flags: <defaults>
</compile_context>

<pallas_src>
import numpy as np
import jax
import jax.numpy as jnp
from jax.experimental import pallas as pl
from jax.experimental.pallas import tpu as pltpu


def _spectral_conv2d_kernel(x_ref, e_ref, wr_ref, wi_ref, g_ref, o_ref):
    # x_ref : (1, Cin, H*W)     input block for one batch element (f32 or bf16)
    # e_ref : (H*W, 2*Mp)       fused forward basis  [ er | ei ]
    # wr/wi : (Cin, Cout, Mp)   complex mode-mixing weights (f32, lane-padded)
    # g_ref : (2*Mp, H*W)       fused inverse basis  [[ gr ], [ -gi ]]  (norm + doubling folded in)
    # o_ref : (1, Cout, H*W)    NCHW-native output block
    Cin, Cout, Mp = wr_ref.shape

    x = x_ref[0]                                                       # (Cin, H*W)

    # --- 1) truncated forward rfft2: one fused MXU matmul -> [xr | xi] ---
    xf = jnp.dot(x, e_ref[...], preferred_element_type=jnp.float32)   # (Cin, 2*Mp) f32
    xr = xf[:, :Mp]                                                    # lane-aligned split
    xi = xf[:, Mp:]

    # --- 2) per-mode complex channel mixing, vectorized on the VPU ---
    wr = wr_ref[...]
    wi = wi_ref[...]
    xr_b = xr[:, None, :]                                              # (Cin, 1, Mp)
    xi_b = xi[:, None, :]
    yr = jnp.sum(xr_b * wr - xi_b * wi, axis=0)                        # (Cout, Mp) f32
    yi = jnp.sum(xr_b * wi + xi_b * wr, axis=0)                        # (Cout, Mp) f32
    y = jnp.concatenate([yr, yi], axis=-1).astype(g_ref.dtype)         # (Cout, 2*Mp) lane-aligned

    # --- 3) inverse transform straight to a lane-dense NCHW slab: one MXU matmul ---
    out = jnp.dot(y, g_ref[...], preferred_element_type=jnp.float32)   # (Cout, H*W)
    o_ref[0] = out.astype(o_ref.dtype)


def spectral_conv2d(x_nchw, weights1, weights2, modes1, modes2, *, mxu_dtype=jnp.float32):
    """PyTorch-convention wrapper.

    x_nchw   : (B, Cin, H, W) float32
    weights1 : (Cin, Cout, modes1, modes2) complex64   (low  ky rows)
    weights2 : (Cin, Cout, modes1, modes2) complex64   (high ky rows)
    mxu_dtype: dtype fed to the MXU for x and the DFT bases (f32 or bf16);
               accumulation, weights and the mode mixing stay f32.
    """
    B, Cin, H, W = x_nchw.shape
    Cout = weights1.shape[1]
    M1, M2 = modes1, modes2
    # standard FNO configuration; otherwise PyTorch's slice assignments overlap
    assert 2 * M1 <= H and M2 <= W // 2 + 1
    HW = H * W
    M = 2 * M1 * M2
    Mp = max(128, ((M + 127) // 128) * 128)      # lane-pad retained modes to 128 multiple

    # ---- compile-time truncated-DFT bases (numpy constants) ----
    rows = np.concatenate([np.arange(M1), np.arange(H - M1, H)]).astype(np.float64)
    cols = np.arange(M2, dtype=np.float64)
    yy = np.arange(H, dtype=np.float64)
    xx = np.arange(W, dtype=np.float64)
    # phase[(r, c), (y, x)] = 2*pi*(k_r*y/H + c*x/W)
    ph = (2.0 * np.pi) * (rows[:, None, None, None] * yy[None, None, :, None] / H
                          + cols[None, :, None, None] * xx[None, None, None, :] / W)
    ph = ph.reshape(M, HW)

    er = np.cos(ph).T                            # (HW, M)  forward exp(-i*ph) real
    ei = (-np.sin(ph)).T                         # (HW, M)  forward exp(-i*ph) imag
    # Hermitian doubling (kx=0 and Nyquist columns appear once in the half-spectrum)
    c_idx = np.arange(M2)
    dbl = np.where((c_idx == 0) | ((W % 2 == 0) & (c_idx == W // 2)), 1.0, 2.0)
    s = (np.tile(dbl, 2 * M1).reshape(M, 1)) / HW    # "backward" 1/(H*W) norm folded in
    gr = s * np.cos(ph)                          # (M, HW)  inverse basis real
    gi = s * np.sin(ph)                          # (M, HW)  inverse basis imag

    # fused, lane-padded bases: a single forward and a single inverse matmul
    E = np.zeros((HW, 2 * Mp), np.float64)
    E[:, :M] = er
    E[:, Mp:Mp + M] = ei
    G = np.zeros((2 * Mp, HW), np.float64)
    G[:M, :] = gr
    G[Mp:Mp + M, :] = -gi
    E = jnp.asarray(E.astype(np.float32)).astype(mxu_dtype)
    G = jnp.asarray(G.astype(np.float32)).astype(mxu_dtype)

    # weights: low-frequency rows (weights1) then high-frequency rows (weights2), lane-padded
    w_cat = jnp.concatenate([weights1, weights2], axis=2).reshape(Cin, Cout, M)
    wr = jnp.zeros((Cin, Cout, Mp), jnp.float32).at[..., :M].set(
        jnp.real(w_cat).astype(jnp.float32))
    wi = jnp.zeros((Cin, Cout, Mp), jnp.float32).at[..., :M].set(
        jnp.imag(w_cat).astype(jnp.float32))

    x3 = x_nchw.reshape(B, Cin, HW).astype(mxu_dtype)   # contiguous reshape, free

    # ---- VMEM budget (guard for v7x's 64 MiB physical / default scoped limits) ----
    bpe = np.dtype(mxu_dtype).itemsize
    out_itemsize = np.dtype(x_nchw.dtype).itemsize
    resident_bytes = ((HW * 2 * Mp + 2 * Mp * HW) * bpe        # E + G (resident, const index_map)
                      + 2 * Cin * Cout * Mp * 4                # wr + wi
                      + 2 * Cin * HW * bpe                     # x block, double-buffered
                      + 2 * Cout * HW * out_itemsize)          # out block, double-buffered
    # TODO(synk): for large H*W / mode counts, tile the H*W axis (or switch to
    # separable 1-D DFT bases) instead of asserting.
    assert 2 * resident_bytes + (4 << 20) <= (60 << 20), (
        "spectral bases exceed the v7x 64 MiB VMEM budget; tile H*W or use "
        "separable 1-D DFT bases")
    vmem_limit = int(min(max(2 * resident_bytes + (4 << 20), 32 << 20), 64 << 20))

    flops = int(2 * B * Cin * HW * (2 * Mp)          # fused forward matmul
                + 8 * B * Cin * Cout * Mp            # complex mode mixing
                + 2 * B * Cout * (2 * Mp) * HW)      # fused inverse matmul
    bytes_accessed = int(B * Cin * HW * bpe + (HW * 2 * Mp + 2 * Mp * HW) * bpe
                         + 2 * Cin * Cout * Mp * 4 + B * Cout * HW * out_itemsize)

    out = pl.pallas_call(
        _spectral_conv2d_kernel,
        out_shape=jax.ShapeDtypeStruct((B, Cout, HW), x_nchw.dtype),
        grid_spec=pltpu.PrefetchScalarGridSpec(
            num_scalar_prefetch=0,
            grid=(B,),                               # batch axis -> both TCs on v7x, DMA pipelining
            in_specs=[
                pl.BlockSpec((1, Cin, HW), lambda b: (b, 0, 0)),      # per-batch x block
                pl.BlockSpec((HW, 2 * Mp), lambda b: (0, 0)),         # resident forward basis
                pl.BlockSpec((Cin, Cout, Mp), lambda b: (0, 0, 0)),   # resident weights (re)
                pl.BlockSpec((Cin, Cout, Mp), lambda b: (0, 0, 0)),   # resident weights (im)
                pl.BlockSpec((2 * Mp, HW), lambda b: (0, 0)),         # resident inverse basis
            ],
            out_specs=pl.BlockSpec((1, Cout, HW), lambda b: (b, 0, 0)),
        ),
        compiler_params=pltpu.CompilerParams(
            dimension_semantics=("parallel",),
            vmem_limit_bytes=vmem_limit),
        cost_estimate=pl.CostEstimate(flops=flops, transcendentals=0,
                                      bytes_accessed=bytes_accessed),
    )(x3, E, wr, wi, G)

    return out.reshape(B, Cout, H, W)                # contiguous reshape, free


def spectral_conv2d_ref(x, weights1, weights2, modes1, modes2):
    """Plain-JAX reference mirroring the PyTorch module (rfft2 / irfft2)."""
    B, Cin, H, W = x.shape
    Cout = weights1.shape[1]
    x_ft = jnp.fft.rfft2(x)                                    # (B, Cin, H, W//2+1)
    out_ft = jnp.zeros((B, Cout, H, W // 2 + 1), dtype=jnp.complex64)
    lo = jnp.einsum('bixy,ioxy->boxy', x_ft[:, :, :modes1, :modes2], weights1,
                    precision=jax.lax.Precision.HIGHEST)
    hi = jnp.einsum('bixy,ioxy->boxy', x_ft[:, :, -modes1:, :modes2], weights2,
                    precision=jax.lax.Precision.HIGHEST)
    out_ft = out_ft.at[:, :, :modes1, :modes2].set(lo)
    out_ft = out_ft.at[:, :, -modes1:, :modes2].set(hi)
    return jnp.fft.irfft2(out_ft, s=(H, W))


if __name__ == "__main__":
    # SpectralConv2d_fast(in_channels=4, out_channels=8, modes1=4, modes2=4)
    B, Cin, Cout, H, W = 2, 4, 8, 16, 16
    modes1, modes2 = 4, 4

    key = jax.random.PRNGKey(0)
    kx, k1r, k1i, k2r, k2i = jax.random.split(key, 5)
    x = jax.random.normal(kx, (B, Cin, H, W), jnp.float32)

    # parameter init per the module: scale * rand(..., dtype=cfloat)
    scale = 1.0 / (Cin * Cout)
    w1 = (scale * (jax.random.uniform(k1r, (Cin, Cout, modes1, modes2))
                   + 1j * jax.random.uniform(k1i, (Cin, Cout, modes1, modes2)))
          ).astype(jnp.complex64)
    w2 = (scale * (jax.random.uniform(k2r, (Cin, Cout, modes1, modes2))
                   + 1j * jax.random.uniform(k2i, (Cin, Cout, modes1, modes2)))
          ).astype(jnp.complex64)

    ref = spectral_conv2d_ref(x, w1, w2, modes1, modes2)

    # f32 MXU path (exact up to f32 rounding)
    out = spectral_conv2d(x, w1, w2, modes1, modes2, mxu_dtype=jnp.float32)
    jax.block_until_ready(out)
    assert out.shape == (B, Cout, H, W)
    err_f32 = float(jnp.max(jnp.abs(out - ref)))
    assert jnp.allclose(out, ref, atol=2e-3, rtol=2e-3), err_f32

    # bf16 MXU-input path (f32 accumulation / mixing) — the v6e/v7x fast path
    out_bf16 = spectral_conv2d(x, w1, w2, modes1, modes2, mxu_dtype=jnp.bfloat16)
    jax.block_until_ready(out_bf16)
    err_bf16 = float(jnp.max(jnp.abs(out_bf16 - ref)))
    assert jnp.allclose(out_bf16, ref, atol=5e-2, rtol=5e-2), err_bf16

    print("KERNEL_OK")
</pallas_src>

<mosaic_0001>
module attributes {stable_mosaic.version = 11 : i64} {
  func.func @_spectral_conv2d_kernel(%arg0: i32, %arg1: memref<1x4x256xf32, #tpu.memory_space<vmem>>, %arg2: memref<256x256xf32, #tpu.memory_space<vmem>>, %arg3: memref<4x8x128xf32, #tpu.memory_space<vmem>>, %arg4: memref<4x8x128xf32, #tpu.memory_space<vmem>>, %arg5: memref<256x256xf32, #tpu.memory_space<vmem>>, %arg6: memref<1x8x256xf32, #tpu.memory_space<vmem>>) attributes {dimension_semantics = [#tpu.dimension_semantics<parallel>], iteration_bounds = array<i64: 2>, scalar_prefetch = 0 : i64, scratch_operands = 0 : i64, tpu.core_type = #tpu.core_type<tc>, window_params = [{transform_indices = @transform_0, window_bounds = array<i64: 1, 4, 256>}, {pipeline_mode = #tpu.pipeline_mode<synchronous>, transform_indices = @transform_1, window_bounds = array<i64: 256, 256>}, {pipeline_mode = #tpu.pipeline_mode<synchronous>, transform_indices = @transform_2, window_bounds = array<i64: 4, 8, 128>}, {pipeline_mode = #tpu.pipeline_mode<synchronous>, transform_indices = @transform_3, window_bounds = array<i64: 4, 8, 128>}, {pipeline_mode = #tpu.pipeline_mode<synchronous>, transform_indices = @transform_4, window_bounds = array<i64: 256, 256>}, {transform_indices = @transform_5, window_bounds = array<i64: 1, 8, 256>}]} {
    %c0 = arith.constant 0 : index
    %c0_0 = arith.constant 0 : index
    %c0_1 = arith.constant 0 : index
    %0 = vector.load %arg1[%c0, %c0_0, %c0_1] : memref<1x4x256xf32, #tpu.memory_space<vmem>>, vector<1x4x256xf32>
    %1 = vector.shape_cast %0 : vector<1x4x256xf32> to vector<4x256xf32>
    %c0_2 = arith.constant 0 : index
    %c0_3 = arith.constant 0 : index
    %2 = vector.load %arg2[%c0_2, %c0_3] : memref<256x256xf32, #tpu.memory_space<vmem>>, vector<256x256xf32>
    %cst = arith.constant dense<0.000000e+00> : vector<4x256xf32>
    %3 = tpu.matmul %1, %2, %cst {dimension_numbers = #tpu.dot_dimension_numbers<[1], [0], [0], [1], [0, 0, 1, 1], [], []>} : vector<4x256xf32>, vector<256x256xf32>, vector<4x256xf32> -> vector<4x256xf32>
    %4 = vector.extract_strided_slice %3 {offsets = [0, 0], sizes = [4, 128], strides = [1, 1]} : vector<4x256xf32> to vector<4x128xf32>
    %5 = vector.extract_strided_slice %3 {offsets = [0, 128], sizes = [4, 128], strides = [1, 1]} : vector<4x256xf32> to vector<4x128xf32>
    %c0_4 = arith.constant 0 : index
    %c0_5 = arith.constant 0 : index
    %c0_6 = arith.constant 0 : index
    %6 = vector.load %arg3[%c0_4, %c0_5, %c0_6] : memref<4x8x128xf32, #tpu.memory_space<vmem>>, vector<4x8x128xf32>
    %c0_7 = arith.constant 0 : index
    %c0_8 = arith.constant 0 : index
    %c0_9 = arith.constant 0 : index
    %7 = vector.load %arg4[%c0_7, %c0_8, %c0_9] : memref<4x8x128xf32, #tpu.memory_space<vmem>>, vector<4x8x128xf32>
    %8 = vector.shape_cast %4 : vector<4x128xf32> to vector<4x1x128xf32>
    %9 = vector.shape_cast %5 : vector<4x128xf32> to vector<4x1x128xf32>
    %10 = vector.broadcast %8 : vector<4x1x128xf32> to vector<4x8x128xf32>
    %11 = arith.mulf %10, %6 : vector<4x8x128xf32>
    %12 = vector.broadcast %9 : vector<4x1x128xf32> to vector<4x8x128xf32>
    %13 = arith.mulf %12, %7 : vector<4x8x128xf32>
    %14 = arith.subf %11, %13 : vector<4x8x128xf32>
    %cst_10 = arith.constant dense<0.000000e+00> : vector<8x128xf32>
    %15 = vector.multi_reduction <add>, %14, %cst_10 [0] : vector<4x8x128xf32> to vector<8x128xf32>
    %16 = vector.broadcast %8 : vector<4x1x128xf32> to vector<4x8x128xf32>
    %17 = arith.mulf %16, %7 : vector<4x8x128xf32>
    %18 = vector.broadcast %9 : vector<4x1x128xf32> to vector<4x8x128xf32>
    %19 = arith.mulf %18, %6 : vector<4x8x128xf32>
    %20 = arith.addf %17, %19 : vector<4x8x128xf32>
    %cst_11 = arith.constant dense<0.000000e+00> : vector<8x128xf32>
    %21 = vector.multi_reduction <add>, %20, %cst_11 [0] : vector<4x8x128xf32> to vector<8x128xf32>
    %22 = tpu.concatenate %15, %21 in 1 : vector<8x128xf32>, vector<8x128xf32> -> vector<8x256xf32>
    %c0_12 = arith.constant 0 : index
    %c0_13 = arith.constant 0 : index
    %23 = vector.load %arg5[%c0_12, %c0_13] : memref<256x256xf32, #tpu.memory_space<vmem>>, vector<256x256xf32>
    %cst_14 = arith.constant dense<0.000000e+00> : vector<8x256xf32>
    %24 = tpu.matmul %22, %23, %cst_14 {dimension_numbers = #tpu.dot_dimension_numbers<[1], [0], [0], [1], [0, 0, 1, 1], [], []>} : vector<8x256xf32>, vector<256x256xf32>, vector<8x256xf32> -> vector<8x256xf32>
    %c0_15 = arith.constant 0 : index
    %c0_16 = arith.constant 0 : index
    %c0_17 = arith.constant 0 : index
    %25 = vector.load %arg6[%c0_15, %c0_16, %c0_17] : memref<1x8x256xf32, #tpu.memory_space<vmem>>, vector<1x8x256xf32>
    %26 = vector.shape_cast %25 : vector<1x8x256xf32> to vector<8x256xf32>
    %27 = vector.shape_cast %24 : vector<8x256xf32> to vector<1x8x256xf32>
    tpu.vector_store %arg6[%c0_15, %c0_16, %c0_17], %27 {strides = array<i32>} : memref<1x8x256xf32, #tpu.memory_space<vmem>>, vector<1x8x256xf32>,
    return
  }
  func.func @transform_0(%arg0: i32) -> (i32, i32, i32) {
    %c0_i32 = arith.constant 0 : i32
    %c0_i32_0 = arith.constant 0 : i32
    %c0_i32_1 = arith.constant 0 : i32
    return %arg0, %c0_i32, %c0_i32_0 : i32, i32, i32
  }
  func.func @transform_1(%arg0: i32) -> (i32, i32) {
    %c0_i32 = arith.constant 0 : i32
    %c0_i32_0 = arith.constant 0 : i32
    %c0_i32_1 = arith.constant 0 : i32
    return %c0_i32, %c0_i32_0 : i32, i32
  }
  func.func @transform_2(%arg0: i32) -> (i32, i32, i32) {
    %c0_i32 = arith.constant 0 : i32
    %c0_i32_0 = arith.constant 0 : i32
    %c0_i32_1 = arith.constant 0 : i32
    %c0_i32_2 = arith.constant 0 : i32
    return %c0_i32, %c0_i32_0, %c0_i32_1 : i32, i32, i32
  }
  func.func @transform_3(%arg0: i32) -> (i32, i32, i32) {
    %c0_i32 = arith.constant 0 : i32
    %c0_i32_0 = arith.constant 0 : i32
    %c0_i32_1 = arith.constant 0 : i32
    %c0_i32_2 = arith.constant 0 : i32
    return %c0_i32, %c0_i32_0, %c0_i32_1 : i32, i32, i32
  }
  func.func @transform_4(%arg0: i32) -> (i32, i32) {
    %c0_i32 = arith.constant 0 : i32
    %c0_i32_0 = arith.constant 0 : i32
    %c0_i32_1 = arith.constant 0 : i32
    return %c0_i32, %c0_i32_0 : i32, i32
  }
  func.func @transform_5(%arg0: i32) -> (i32, i32, i32) {
    %c0_i32 = arith.constant 0 : i32
    %c0_i32_0 = arith.constant 0 : i32
    %c0_i32_1 = arith.constant 0 : i32
    return %arg0, %c0_i32, %c0_i32_0 : i32, i32, i32
  }
}

</mosaic_0001>

<bundles_post_ra>
// kernel: tpu_custom_call.1
= control target key start
LH: loop header
LB: loop body
LE: loop exit
PB: predicated region body
PF: predicated region fallthrough
CT: control target
= control target key end

     0   :  { %10 = vsyncpa [#allocation3], 0  ;;  %s1410_s0 = inlined_call_operand.hbm [shape: f32[2,4,256], index: 0, kind: input, shape index: {}]   ;;  %s1411_s1 = inlined_call_operand.hbm [shape: f32[256,256], index: 1, kind: input, shape index: {}]   ;;  %s1412_s2 = inlined_call_operand.hbm [shape: f32[4,8,128], index: 2, kind: input, shape index: {}]   ;;  %s1413_s3 = inlined_call_operand.hbm [shape: f32[4,8,128], index: 3, kind: input, shape index: {}]   ;;  %s1414_s4 = inlined_call_operand.hbm [shape: f32[256,256], index: 4, kind: input, shape index: {}]   ;;  %s1415_s5 = inlined_call_operand.hbm [shape: f32[2,8,256], index: 5, kind: output, shape index: {}]  }
   0x1   :  { %12 = vsyncpa [#allocation3 + $0x1], 0 }
   0x2   :  { %13 = vsyncpa [#allocation6], 0 }
   0x3   :  { %14 = vsyncpa [#allocation9], 0 }
   0x4   :  { %15 = vsyncpa [#allocation4], 0 }
   0x5   :  { %17 = vsyncpa [#allocation4 + $0x1], 0  ;;  %s1190_s18 = smov 0   ;;  %s1192_s19 = smov 0  }
   0x6   :  { %s1194_s20 = smov 0   ;;  %s1196_s21 = smov 0  }
   0x7 LB: > { %s1149_s22 = smov [#allocation5]   ;;  %s1211_s24 = sadd.s32 4294967295, %s1147_s21   ;;  %s1147_s21 = sphi %s1196_s21, %s1439_s21   ;;  %s1143_s20 = sphi %s1194_s20, %s1438_s20   ;;  %s1139_s19 = sphi %s1192_s19, %s1437_s19   ;;  %s1135_s18 = sphi %s1190_s18, %s1436_s18  }
   0x8   : > { %s176_s23 = sshll.u32 %s1149_s22, 4  ;;  %p827_p0 = scmp.ge.s32.totalorder %s1147_s21, 1  ;;  %s177_s23 = int_to_ptr.vmem [resolvable:$true] %s176_s23 }
   0x9   : > { %p1416_p1 = scmp.eq.s32.totalorder %s1211_s24, 0  ;;  %p164_p2 = scmp.lt.s32.totalorder %s1147_s21, 3 }
   0xa   : > { %s1150_s27 = smov [#allocation8]   ;;  %s1151_s29 = smov [#allocation7]  }
   0xb   : > { %p1216_p3 = pnand %p827_p0, %p164_p2  ;;  %s202_s28 = sshll.u32 %s1150_s27, 4  ;;  %s1229_s28 = int_to_ptr.vmem [resolvable:$true] %s202_s28 }
   0xc   : > { %s1231_s30 = sshll.u32 %s1151_s29, 4  ;;  %s954_s6 = scalar_lea.vmem %s177_s23, 8192  ;;  %s190_s30 = int_to_ptr.vmem [resolvable:$true] %s1231_s30 }
   0xd   : > { %s1420_s25 = scalar_select %p1216_p3, 1, 0 }
   0xe   : > { %p870_p5 = pneg %p1216_p3  ;;  %p955_p8 = scmp.ne.s32.totalorder %s177_s23, %s954_s6 }
   0xf   : > { %p962_p11 = scmp.lt.s32.totalorder %s177_s23, %s177_s23  ;;  %p963_p12 = scmp.lt.s32.totalorder %s954_s6, %s954_s6 }
  0x10   : > { %p1225_p6 = pnand %p870_p5, %p1416_p1 }
  0x11   : > { %p964_p13 = por %p963_p12, %p962_p11 }
  0x12   : > { %p945_p7 = pneg %p1225_p6 }
  0x14   : > { %p957_p9 = pnand %p955_p8, %p945_p7 }
  0x16   : > { %p958_p10 = pneg %p957_p9 }
  0x18   : > { %p965_p0 = pnand %p964_p13, %p958_p10 }
  0x1a   : > { %968 = shalt.err (!%p965_p0)
}
  0x1b   : > { %s1152_s7 = smov 256   ;;  %s1153_s8 = smov 16  }
  0x1c   : > { %873 = dma.hbm_to_vmem [thread:$0]  (!%p1225_p6), %s1411_s1, 8192, %s177_s23, [#allocation6], %s1152_s7, %s1152_s7, %s1153_s8  }
  0x1d   : > { %s980_s11 = scalar_lea.vmem %s1229_s28, 512  ;;  %p988_p9 = scmp.lt.s32.totalorder %s1229_s28, %s1229_s28 }
  0x1e   : > { %p981_p2 = scmp.ne.s32.totalorder %s1229_s28, %s980_s11  ;;  %p989_p10 = scmp.lt.s32.totalorder %s980_s11, %s980_s11 }
  0x20   : > { %p983_p5 = pnand %p981_p2, %p945_p7  ;;  %p990_p11 = por %p989_p10, %p988_p9 }
  0x22   : > { %p984_p8 = pneg %p983_p5 }
  0x24   : > { %p991_p12 = pnand %p990_p11, %p984_p8 }
  0x26   : > { %994 = shalt.err (!%p991_p12)
}
  0x27   : > { %s1154_s12 = smov 128   ;;  %s1155_s13 = smov 8  }
  0x28   : > { %879 = dma.hbm_to_vmem [thread:$0]  (!%p1225_p6), %s1413_s3, 512, %s1229_s28, [#allocation9], %s1154_s12, %s1154_s12, %s1155_s13  }
  0x29   : > { %s1006_s16 = scalar_lea.vmem %s190_s30, 512  ;;  %p1014_p5 = scmp.lt.s32.totalorder %s190_s30, %s190_s30 }
  0x2a   : > { %p1007_p13 = scmp.ne.s32.totalorder %s190_s30, %s1006_s16  ;;  %p1015_p8 = scmp.lt.s32.totalorder %s1006_s16, %s1006_s16 }
  0x2c   : > { %p1009_p0 = pnand %p1007_p13, %p945_p7  ;;  %p1016_p9 = por %p1015_p8, %p1014_p5 }
  0x2e   : > { %p1010_p2 = pneg %p1009_p0 }
  0x30   : > { %p1017_p10 = pnand %p1016_p9, %p1010_p2 }
  0x32   : > { %1020 = shalt.err (!%p1017_p10)
}
  0x33   : > { %876 = dma.hbm_to_vmem [thread:$0]  (!%p1225_p6), %s1412_s2, 512, %s190_s30, [#allocation6], %s1154_s12, %s1154_s12, %s1155_s13  }
  0x34   : > { %s1156_s23 = smov [#allocation10]  }
  0x35   : > { %s215_s27 = sshll.u32 %s1156_s23, 4  ;;  %s216_s27 = int_to_ptr.vmem [resolvable:$true] %s215_s27 }
  0x36   : > { %s1032_s28 = scalar_lea.vmem %s216_s27, 8192  ;;  %p1040_p0 = scmp.lt.s32.totalorder %s216_s27, %s216_s27 }
  0x37   : > { %p1033_p11 = scmp.ne.s32.totalorder %s216_s27, %s1032_s28  ;;  %p1041_p5 = scmp.lt.s32.totalorder %s1032_s28, %s1032_s28 }
  0x39   : > { %p1035_p12 = pnand %p1033_p11, %p945_p7  ;;  %p1042_p2 = por %p1041_p5, %p1040_p0 }
  0x3b   : > { %p1036_p13 = pneg %p1035_p12 }
  0x3d   : > { %p1043_p8 = pnand %p1042_p2, %p1036_p13 }
  0x3f   : > { %1046 = shalt.err (!%p1043_p8)
}
  0x40   : > { %882 = dma.hbm_to_vmem [thread:$0]  (!%p1225_p6), %s1414_s4, 8192, %s216_s27, [#allocation9], %s1152_s7, %s1152_s7, %s1153_s8  }
  0x41   : > { %s826_s26 = sadd.s32 4294967294, %s1147_s21   ;;  %s1281_s6 = sadd.s32 1, %s1147_s21  }
  0x42   : > { %s27_s9 = ssub.s32 %s1147_s21, %s1281_s6  ;;  %s30_s10 = sadd.s32 1, %s1143_s20 }
  0x43   : > { %p28_p7 = scmp.eq.s32.totalorder %s27_s9, 0  ;;  %p37_p9 = scmp.ne.s32.totalorder %s1143_s20, %s1139_s19 }
  0x44   : > { %p38_p10 = scmp.eq.s32.totalorder %s1147_s21, 0  ;;  %p43_p11 = scmp.ne.s32.totalorder %s1139_s19, %s1135_s18 }
  0x45   : > { %s1292_s11 = scalar_select %p28_p7, %s1143_s20, %s30_s10  }
  0x46   : > { %p1294_p12 = por %p38_p10, %p37_p9  ;;  %p1300_p6 = por %p1416_p1, %p43_p11 }
  0x47   : > { %p151_p13 = scmp.eq.s32.totalorder %s1211_s24, 1  ;;  %p157_p0 = scmp.eq.s32.totalorder %s826_s26, 1 }
  0x48   : > { %s1423_s7 = scalar_select %p1300_p6, 1, 0 }
  0x49   : > { %p895_p5 = scmp.lt.s32.totalorder %s1147_s21, 2  ;;  %s229_s8 = sand.u32 1, %s1143_s20  }
  0x4a   : > { %p1307_p2 = por %p151_p13, %p37_p9  ;;  %p1311_p8 = por %p157_p0, %p43_p11 }
  0x4b   : > { %s833_s15 = sshll.u32 %s229_s8, 3  ;;  %s848_s16 = sshll.u32 %s1147_s21, 7 }
  0x4c   : > { %s1424_s13 = scalar_select %p1307_p2, 1, 0 }
  0x4d   : > { %s1425_s14 = scalar_select %p1311_p8, 1, 0 }
  0x4e   : > { %s1319_s23 = scalar_lea.hbm %s1410_s0, %s848_s16  ;;  %s233_s27 = scalar_lea.vmem [#allocation2], %s833_s15 }
  0x4f   : > { %s241_s28 = sshll.u32 %s233_s27, 4  ;;  %p1323_p7 = pnand %p895_p5, %p1294_p12  ;;  %s242_s28 = int_to_ptr.vmem [resolvable:$true] %s241_s28 }
  0x50   : > { %s230_s30 = scalar_lea.sflag [#allocation3], %s229_s8  ;;  %s1047_s26 = scalar_lea.hbm %s1319_s23, 128 }
  0x51   : > { %p1048_p9 = scmp.ne.s32.totalorder %s1319_s23, %s1047_s26  ;;  %p1049_p10 = pneg %p1323_p7 }
  0x52   : > { %s1052_s16 = scalar_lea.hbm %s1410_s0, 256  ;;  %p1053_p0 = scmp.lt.s32.totalorder %s1319_s23, %s1410_s0 }
  0x53   : > { %p1050_p11 = pnand %p1049_p10, %p1048_p9  ;;  %p1054_p12 = scmp.lt.s32.totalorder %s1052_s16, %s1047_s26 }
  0x55   : > { %p1051_p13 = pneg %p1050_p11  ;;  %p1055_p5 = por %p1054_p12, %p1053_p0 }
  0x57   : > { %p1056_p4 = pnand %p1055_p5, %p1051_p13 }
  0x59   : > { %1059 = shalt.err (!%p1056_p4)
}
  0x5a   : > { %s1060_s12 = scalar_lea.vmem %s242_s28, 128  ;;  %s1157_s8 = smov [#allocation2]  }
  0x5b   : > { %p1061_p1 = scmp.ne.s32.totalorder %s242_s28, %s1060_s12  ;;  %s1065_s22 = sshll.u32 %s1157_s8, 4  ;;  %s1066_s22 = int_to_ptr.vmem [resolvable:$false] %s1065_s22 }
  0x5c   : > { %s1067_s27 = scalar_lea.vmem %s1066_s22, 256  ;;  %p1068_p9 = scmp.lt.s32.totalorder %s242_s28, %s1066_s22 }
  0x5d   : > { %p1063_p8 = pnand %p1061_p1, %p1049_p10  ;;  %p1069_p11 = scmp.lt.s32.totalorder %s1067_s27, %s1060_s12 }
  0x5f   : > { %p1064_p2 = pneg %p1063_p8  ;;  %p1070_p6 = por %p1069_p11, %p1068_p9 }
  0x61   : > { %p1071_p3 = pnand %p1070_p6, %p1064_p2 }
  0x63   : > { %1074 = shalt.err (!%p1071_p3)
}
  0x64   : > { %886 = dma.hbm_to_vmem [thread:$0]  (!%p1323_p7), %s1319_s23, 128, %s242_s28, %s230_s30  }
  0x65   : > { %p1427_p13 = scmp.ne.s32.totalorder %s1420_s25, 0 }
  0x66   : > { %s1344_s26 = sand.u32 (!%p1427_p13), 1, %s1139_s19   ;;  %p1428_p1 = scmp.ne.s32.totalorder (!%p1427_p13), %s1423_s7, 0 }
  0x67   : > { %250 = sbr.rel (%p1427_p13) target bundleno = 603 (0x25b), region = 40  ;;  %s837_s9 = sshll.u32 (!%p1427_p13), %s1344_s26, 3 }
  0x68   : > { %s253_s10 = scalar_lea.sflag (!%p1427_p13), [#allocation3], %s1344_s26  ;;  %s1348_s16 = scalar_lea.vmem (!%p1427_p13), [#allocation2], %s837_s9 }
  0x6c   : > { %1118 = dma.done.wait (%p1428_p1), %s253_s10, 128  }
  0x6d   : > { %1120 = vsyncadd (%p1428_p1), %s253_s10, 4294967168  ;;  %p1429_p3 = scmp.eq.s32.totalorder %s1211_s24, 0 }
  0x6f   : > { %1122 = dma.done.wait (%p1429_p3), [#allocation6], 8704   ;;  %p1430_p4 = pmov %p1429_p3 }
  0x70   : > { %p1431_p6 = pmov %p1429_p3 }
  0x71   : > { %1124 = vsyncadd (%p1430_p4), [#allocation6], 4294958592 }
  0x72   : > { %1126 = dma.done.wait (%p1431_p6), [#allocation9], 8704   ;;  %p1432_p2 = pmov %p1429_p3 }
  0x73   : > { %v331_v0 = vld [vmem:[#allocation5 + $0xf8] sm:$0xff]  ;;  %v330_v1 = vld [vmem:[#allocation5 + $0xf0] sm:$0xff]  ;;  %v329_v2 = vld [vmem:[#allocation5 + $0xe8] sm:$0xff]  ;;  %s842_s25 = sshll.u32 %s1344_s26, 4  ;;  %s849_s28 = sshll.u32 %s1211_s24, 8 }
  0x74   : > { %1128 = vsyncadd (%p1432_p2), [#allocation9], 4294958592  ;;  %367 = vmatprep.subr.mxu0 %v331_v0  ;;  %v328_v3 = vld [vmem:[#allocation5 + $0xe0] sm:$0xff]  ;;  %v327_v4 = vld [vmem:[#allocation5 + $0xd8] sm:$0xff]  ;;  %s298_s7 = scalar_lea.vmem [#allocation11], %s842_s25  ;;  %s716_s15 = scalar_lea.hbm %s1415_s5, %s849_s28 }
  0x75   : > { %368 = vmatpush1.msra.mxu0 %v330_v1  ;;  %v326_v5 = vld [vmem:[#allocation5 + $0xd0] sm:$0xff]  ;;  %v325_v6 = vld [vmem:[#allocation5 + $0xc8] sm:$0xff]  ;;  %v324_v7 = vld [vmem:[#allocation5 + $0xc0] sm:$0xff]  ;;  %s718_s23 = sshll.u32 %s298_s7, 4  ;;  %s704_s17 = scalar_lea.sflag [#allocation4], %s1344_s26  ;;  %s1370_s23 = int_to_ptr.vmem [resolvable:$true] %s718_s23 }
  0x76   : > { %369 = vmatprep.subr.mxu0 %v329_v2  ;;  %v323_v8 = vld [vmem:[#allocation5 + $0xb8] sm:$0xff]  ;;  %v322_v9 = vld [vmem:[#allocation5 + $0xb0] sm:$0xff]  ;;  %v321_v10 = vld [vmem:[#allocation5 + $0xa8] sm:$0xff]  ;;  %s1075_s12 = scalar_lea.vmem %s1370_s23, 256  ;;  %p1433_p7 = scmp.ne.s32.totalorder %s1424_s13, 0 }
  0x77   : > { %370 = vmatpush1.msra.mxu0 %v328_v3  ;;  %v320_v11 = vld [vmem:[#allocation5 + $0xa0] sm:$0xff]  ;;  %v319_v12 = vld [vmem:[#allocation5 + $0x98] sm:$0xff]  ;;  %v318_v13 = vld [vmem:[#allocation5 + $0x90] sm:$0xff]  ;;  %p1076_p8 = scmp.ne.s32.totalorder %s1370_s23, %s1075_s12  ;;  %s1159_s24 = smov [#allocation11]  }
  0x78   : > { %371 = vmatprep.subr.mxu0 %v327_v4  ;;  %v317_v14 = vld [vmem:[#allocation5 + $0x88] sm:$0xff]  ;;  %v316_v15 = vld [vmem:[#allocation5 + $0x80] sm:$0xff]  ;;  %v315_v16 = vld [vmem:[#allocation5 + $0x78] sm:$0xff]  ;;  %s1079_s8 = sshll.u32 %s1159_s24, 4  ;;  %s1080_s8 = int_to_ptr.vmem [resolvable:$false] %s1079_s8 }
  0x79   : > { %372 = vmatpush1.msra.mxu0 %v326_v5  ;;  %v314_v17 = vld [vmem:[#allocation5 + $0x70] sm:$0xff]  ;;  %v313_v18 = vld [vmem:[#allocation5 + $0x68] sm:$0xff]  ;;  %v312_v19 = vld [vmem:[#allocation5 + $0x60] sm:$0xff]  ;;  %p1077_p10 = pnand %p1076_p8, %p1433_p7  ;;  %s1081_s22 = scalar_lea.vmem %s1080_s8, 512 }
  0x7a   : > { %373 = vmatprep.subr.mxu0 %v325_v6  ;;  %v311_v20 = vld [vmem:[#allocation5 + $0x58] sm:$0xff]  ;;  %v310_v21 = vld [vmem:[#allocation5 + $0x50] sm:$0xff]  ;;  %v309_v22 = vld [vmem:[#allocation5 + $0x48] sm:$0xff]  ;;  %p1082_p12 = scmp.lt.s32.totalorder %s1370_s23, %s1080_s8  ;;  %p1083_p5 = scmp.lt.s32.totalorder %s1081_s22, %s1075_s12 }
  0x7b   : > { %374 = vmatpush1.msra.mxu0 %v324_v7  ;;  %v308_v23 = vld [vmem:[#allocation5 + $0x40] sm:$0xff]  ;;  %v1363_v24 = vld [vmem:[%s1348_s16] sm:$0xff]  ;;  %v595_v29 = vld [vmem:[#allocation10 + $0xe8] sm:$0xff]  ;;  %p1078_p0 = pneg %p1077_p10 }
  0x7c   : > { %375 = vmatprep.subr.mxu0 %v323_v8  ;;  %v597_v25 = vld [vmem:[#allocation10 + $0xf8] sm:$0xff]  ;;  %v365_v27 = vcombine.high %v1363_v24, %v1363_v24  ;;  %v596_v28 = vld [vmem:[#allocation10 + $0xf0] sm:$0xff]  ;;  %v594_v31 = vld [vmem:[#allocation10 + $0xe0] sm:$0xff]  ;;  %p1084_p9 = por %p1083_p5, %p1082_p12 }
  0x7d   : > { %376 = vmatpush1.msra.mxu0 %v322_v9  ;;  %v307_v26 = vld [vmem:[#allocation5 + $0x38] sm:$0xff]  ;;  %630 = vmatprep.subr.mxu1 %v597_v25  ;;  %v306_v30 = vld [vmem:[#allocation5 + $0x30] sm:$0xff]  ;;  %v305_v32 = vld [vmem:[#allocation5 + $0x28] sm:$0xff] }
  0x7e   : > { %377 = vmatprep.subr.mxu0 %v321_v10  ;;  %631 = vmatpush1.msra.mxu1 %v596_v28  ;;  %v593_v33 = vld [vmem:[#allocation10 + $0xd8] sm:$0xff]  ;;  %v304_v34 = vld [vmem:[#allocation5 + $0x20] sm:$0xff]  ;;  %v592_v35 = vld [vmem:[#allocation10 + $0xd0] sm:$0xff]  ;;  %p1085_p11 = pnand %p1084_p9, %p1078_p0 }
  0x7f   : > { %378 = vmatpush1.msra.mxu0 %v320_v11  ;;  %431 = vmatprep.mubr.f32.mxu0 %v365_v27  ;;  %v303_v36 = vld [vmem:[#allocation5 + $0x18] sm:$0xff]  ;;  %v591_v37 = vld [vmem:[#allocation10 + $0xc8] sm:$0xff]  ;;  %v302_v38 = vld [vmem:[#allocation5 + $0x10] sm:$0xff] }
  0x80   : > { %379 = vmatprep.subr.mxu0 %v319_v12  ;;  %632 = vmatprep.subr.mxu1 %v595_v29  ;;  %v590_v39 = vld [vmem:[#allocation10 + $0xc0] sm:$0xff]  ;;  %v301_v40 = vld [vmem:[#allocation5 + $0x8] sm:$0xff]  ;;  %v589_v41 = vld [vmem:[#allocation10 + $0xb8] sm:$0xff] }
  0x81   : > { %380 = vmatpush1.msra.mxu0 %v318_v13  ;;  %633 = vmatpush1.msra.mxu1 %v594_v31  ;;  %v300_v42 = vld [vmem:[#allocation5] sm:$0xff]  ;;  %v588_v43 = vld [vmem:[#allocation10 + $0xb0] sm:$0xff]  ;;  %v363_v44 = vld [vmem:[#allocation5 + $0x1f8] sm:$0xff] }
  0x82   : > { %381 = vmatprep.subr.mxu0 %v317_v14  ;;  %634 = vmatprep.subr.mxu1 %v593_v33  ;;  %v587_v45 = vld [vmem:[#allocation10 + $0xa8] sm:$0xff]  ;;  %v362_v46 = vld [vmem:[#allocation5 + $0x1f0] sm:$0xff]  ;;  %v586_v47 = vld [vmem:[#allocation10 + $0xa0] sm:$0xff] }
  0x83   : > { %382 = vmatpush1.msra.mxu0 %v316_v15  ;;  %635 = vmatpush1.msra.mxu1 %v592_v35  ;;  %v361_v48 = vld [vmem:[#allocation5 + $0x1e8] sm:$0xff]  ;;  %v585_v49 = vld [vmem:[#allocation10 + $0x98] sm:$0xff]  ;;  %v360_v50 = vld [vmem:[#allocation5 + $0x1e0] sm:$0xff] }
  0x84   : > { %383 = vmatprep.subr.mxu0 %v315_v16  ;;  %636 = vmatprep.subr.mxu1 %v591_v37  ;;  %v584_v51 = vld [vmem:[#allocation10 + $0x90] sm:$0xff]  ;;  %v359_v52 = vld [vmem:[#allocation5 + $0x1d8] sm:$0xff]  ;;  %v583_v53 = vld [vmem:[#allocation10 + $0x88] sm:$0xff] }
  0x85   : > { %384 = vmatpush1.msra.mxu0 %v314_v17  ;;  %637 = vmatpush1.msra.mxu1 %v590_v39  ;;  %v358_v54 = vld [vmem:[#allocation5 + $0x1d0] sm:$0xff]  ;;  %v582_v55 = vld [vmem:[#allocation10 + $0x80] sm:$0xff]  ;;  %v357_v56 = vld [vmem:[#allocation5 + $0x1c8] sm:$0xff] }
  0x86   : > { %385 = vmatprep.subr.mxu0 %v313_v18  ;;  %638 = vmatprep.subr.mxu1 %v589_v41  ;;  %v581_v57 = vld [vmem:[#allocation10 + $0x78] sm:$0xff]  ;;  %v356_v58 = vld [vmem:[#allocation5 + $0x1c0] sm:$0xff]  ;;  %v580_v59 = vld [vmem:[#allocation10 + $0x70] sm:$0xff] }
  0x87   : > { %386 = vmatpush1.msra.mxu0 %v312_v19  ;;  %639 = vmatpush1.msra.mxu1 %v588_v43  ;;  %v355_v60 = vld [vmem:[#allocation5 + $0x1b8] sm:$0xff]  ;;  %v579_v61 = vld [vmem:[#allocation10 + $0x68] sm:$0xff]  ;;  %v354_v62 = vld [vmem:[#allocation5 + $0x1b0] sm:$0xff] }
  0x88   : > { %387 = vmatprep.subr.mxu0 %v311_v20  ;;  %640 = vmatprep.subr.mxu1 %v587_v45  ;;  %v578_v63 = vld [vmem:[#allocation10 + $0x60] sm:$0xff]  ;;  %v353_v0 = vld [vmem:[#allocation5 + $0x1a8] sm:$0xff]  ;;  %v577_v1 = vld [vmem:[#allocation10 + $0x58] sm:$0xff] }
  0x89   : > { %388 = vmatpush1.msra.mxu0 %v310_v21  ;;  %641 = vmatpush1.msra.mxu1 %v586_v47  ;;  %v352_v2 = vld [vmem:[#allocation5 + $0x1a0] sm:$0xff]  ;;  %v576_v3 = vld [vmem:[#allocation10 + $0x50] sm:$0xff]  ;;  %v351_v4 = vld [vmem:[#allocation5 + $0x198] sm:$0xff] }
  0x8a   : > { %389 = vmatprep.subr.mxu0 %v309_v22  ;;  %642 = vmatprep.subr.mxu1 %v585_v49  ;;  %v575_v5 = vld [vmem:[#allocation10 + $0x48] sm:$0xff]  ;;  %v350_v6 = vld [vmem:[#allocation5 + $0x190] sm:$0xff]  ;;  %v574_v7 = vld [vmem:[#allocation10 + $0x40] sm:$0xff] }
  0x8b   : > { %390 = vmatpush1.msra.mxu0 %v308_v23  ;;  %643 = vmatpush1.msra.mxu1 %v584_v51  ;;  %v349_v8 = vld [vmem:[#allocation5 + $0x188] sm:$0xff]  ;;  %v573_v9 = vld [vmem:[#allocation10 + $0x38] sm:$0xff]  ;;  %v348_v10 = vld [vmem:[#allocation5 + $0x180] sm:$0xff] }
  0x8c   : > { %391 = vmatprep.subr.mxu0 %v307_v26  ;;  %644 = vmatprep.subr.mxu1 %v583_v53  ;;  %v572_v11 = vld [vmem:[#allocation10 + $0x30] sm:$0xff]  ;;  %v347_v12 = vld [vmem:[#allocation5 + $0x178] sm:$0xff]  ;;  %v571_v13 = vld [vmem:[#allocation10 + $0x28] sm:$0xff] }
  0x8d   : > { %392 = vmatpush1.msra.mxu0 %v306_v30  ;;  %645 = vmatpush1.msra.mxu1 %v582_v55  ;;  %v346_v14 = vld [vmem:[#allocation5 + $0x170] sm:$0xff]  ;;  %v570_v15 = vld [vmem:[#allocation10 + $0x20] sm:$0xff]  ;;  %v345_v16 = vld [vmem:[#allocation5 + $0x168] sm:$0xff] }
  0x8e   : > { %393 = vmatprep.subr.mxu0 %v305_v32  ;;  %646 = vmatprep.subr.mxu1 %v581_v57  ;;  %v569_v17 = vld [vmem:[#allocation10 + $0x18] sm:$0xff]  ;;  %v344_v18 = vld [vmem:[#allocation5 + $0x160] sm:$0xff]  ;;  %v568_v19 = vld [vmem:[#allocation10 + $0x10] sm:$0xff] }
  0x8f   : > { %394 = vmatpush1.msra.mxu0 %v304_v34  ;;  %647 = vmatpush1.msra.mxu1 %v580_v59  ;;  %v343_v20 = vld [vmem:[#allocation5 + $0x158] sm:$0xff]  ;;  %v567_v21 = vld [vmem:[#allocation10 + $0x8] sm:$0xff]  ;;  %v342_v22 = vld [vmem:[#allocation5 + $0x150] sm:$0xff] }
  0x90   : > { %395 = vmatprep.subr.mxu0 %v303_v36  ;;  %648 = vmatprep.subr.mxu1 %v579_v61  ;;  %v566_v23 = vld [vmem:[#allocation10] sm:$0xff]  ;;  %v341_v25 = vld [vmem:[#allocation5 + $0x148] sm:$0xff]  ;;  %v629_v26 = vld [vmem:[#allocation10 + $0x1f8] sm:$0xff] }
  0x91   : > { %396 = vmatpush1.msra.mxu0 %v302_v38  ;;  %649 = vmatpush1.msra.mxu1 %v578_v63  ;;  %v340_v27 = vld [vmem:[#allocation5 + $0x140] sm:$0xff]  ;;  %v628_v28 = vld [vmem:[#allocation10 + $0x1f0] sm:$0xff]  ;;  %v339_v29 = vld [vmem:[#allocation5 + $0x138] sm:$0xff] }
  0x92   : > { %397 = vmatprep.subr.mxu0 %v301_v40  ;;  %650 = vmatprep.subr.mxu1 %v577_v1  ;;  %v627_v30 = vld [vmem:[#allocation10 + $0x1e8] sm:$0xff]  ;;  %v338_v31 = vld [vmem:[#allocation5 + $0x130] sm:$0xff]  ;;  %v626_v32 = vld [vmem:[#allocation10 + $0x1e0] sm:$0xff] }
  0x93   : > { %398 = vmatpush1.msra.mxu0 %v300_v42  ;;  %651 = vmatpush1.msra.mxu1 %v576_v3  ;;  %v337_v33 = vld [vmem:[#allocation5 + $0x128] sm:$0xff]  ;;  %v625_v34 = vld [vmem:[#allocation10 + $0x1d8] sm:$0xff]  ;;  %v336_v35 = vld [vmem:[#allocation5 + $0x120] sm:$0xff] }
  0x94   : > { %399 = vmatprep.subr.mxu0 %v363_v44  ;;  %652 = vmatprep.subr.mxu1 %v575_v5  ;;  %v624_v36 = vld [vmem:[#allocation10 + $0x1d0] sm:$0xff]  ;;  %v335_v37 = vld [vmem:[#allocation5 + $0x118] sm:$0xff]  ;;  %v623_v38 = vld [vmem:[#allocation10 + $0x1c8] sm:$0xff] }
  0x95   : > { %400 = vmatpush2.msra.mxu0 %v362_v46  ;;  %653 = vmatpush1.msra.mxu1 %v574_v7  ;;  %v334_v39 = vld [vmem:[#allocation5 + $0x110] sm:$0xff]  ;;  %v622_v40 = vld [vmem:[#allocation10 + $0x1c0] sm:$0xff]  ;;  %v333_v41 = vld [vmem:[#allocation5 + $0x108] sm:$0xff] }
  0x96   : > { %401 = vmatprep.subr.mxu0 %v361_v48  ;;  %654 = vmatprep.subr.mxu1 %v573_v9  ;;  %v621_v42 = vld [vmem:[#allocation10 + $0x1b8] sm:$0xff]  ;;  %v332_v43 = vld [vmem:[#allocation5 + $0x100] sm:$0xff]  ;;  %v620_v44 = vld [vmem:[#allocation10 + $0x1b0] sm:$0xff] }
  0x97   : > { %402 = vmatpush2.msra.mxu0 %v360_v50  ;;  %655 = vmatpush1.msra.mxu1 %v572_v11  ;;  %v619_v45 = vld [vmem:[#allocation10 + $0x1a8] sm:$0xff]  ;;  %v618_v46 = vld [vmem:[#allocation10 + $0x1a0] sm:$0xff]  ;;  %v617_v47 = vld [vmem:[#allocation10 + $0x198] sm:$0xff] }
  0x98   : > { %403 = vmatprep.subr.mxu0 %v359_v52  ;;  %656 = vmatprep.subr.mxu1 %v571_v13  ;;  %v616_v48 = vld [vmem:[#allocation10 + $0x190] sm:$0xff]  ;;  %v615_v49 = vld [vmem:[#allocation10 + $0x188] sm:$0xff]  ;;  %v614_v50 = vld [vmem:[#allocation10 + $0x180] sm:$0xff] }
  0x99   : > { %404 = vmatpush2.msra.mxu0 %v358_v54  ;;  %657 = vmatpush1.msra.mxu1 %v570_v15  ;;  %v613_v51 = vld [vmem:[#allocation10 + $0x178] sm:$0xff]  ;;  %v612_v52 = vld [vmem:[#allocation10 + $0x170] sm:$0xff]  ;;  %v611_v53 = vld [vmem:[#allocation10 + $0x168] sm:$0xff] }
  0x9a   : > { %405 = vmatprep.subr.mxu0 %v357_v56  ;;  %658 = vmatprep.subr.mxu1 %v569_v17  ;;  %v610_v54 = vld [vmem:[#allocation10 + $0x160] sm:$0xff]  ;;  %v608_v55 = vld [vmem:[#allocation10 + $0x150] sm:$0xff]  ;;  %v607_v56 = vld [vmem:[#allocation10 + $0x148] sm:$0xff] }
  0x9b   : > { %406 = vmatpush2.msra.mxu0 %v356_v58  ;;  %659 = vmatpush1.msra.mxu1 %v568_v19  ;;  %v606_v57 = vld [vmem:[#allocation10 + $0x140] sm:$0xff]  ;;  %v605_v58 = vld [vmem:[#allocation10 + $0x138] sm:$0xff]  ;;  %v604_v59 = vld [vmem:[#allocation10 + $0x130] sm:$0xff] }
  0x9c   : > { %407 = vmatprep.subr.mxu0 %v355_v60  ;;  %660 = vmatprep.subr.mxu1 %v567_v21  ;;  %v603_v60 = vld [vmem:[#allocation10 + $0x128] sm:$0xff]  ;;  %v602_v61 = vld [vmem:[#allocation10 + $0x120] sm:$0xff]  ;;  %v600_v63 = vld [vmem:[#allocation10 + $0x110] sm:$0xff] }
  0x9d   : > { %408 = vmatpush2.msra.mxu0 %v354_v62  ;;  %661 = vmatpush1.msra.mxu1 %v566_v23  ;;  %v601_v62 = vld [vmem:[#allocation10 + $0x118] sm:$0xff]  ;;  %v598_v1 = vld [vmem:[#allocation10 + $0x100] sm:$0xff] }
  0x9e   : > { %409 = vmatprep.subr.mxu0 %v353_v0  ;;  %662 = vmatprep.subr.mxu1 %v629_v26  ;;  %v599_v0 = vld [vmem:[#allocation10 + $0x108] sm:$0xff]  ;;  %v438_v21 = vld [vmem:[#allocation7] sm:$0xff] }
  0x9f   : > { %410 = vmatpush2.msra.mxu0 %v352_v2  ;;  %663 = vmatpush2.msra.mxu1 %v628_v28  ;;  %v1158_v2 = vmov 1966171168   ;;  %v442_v28 = vld [vmem:[#allocation8] sm:$0xff] }
  0xa0   : > { %411 = vmatprep.subr.mxu0 %v351_v4  ;;  %664 = vmatprep.subr.mxu1 %v627_v30  ;;  %v448_v3 = vunpack.c.l.s4 %v1158_v2  ;;  %v450_v4 = vlaneseq  ;;  %v443_v30 = vld [vmem:[#allocation8 + $0x8] sm:$0xff] }
  0xa1   : > { %412 = vmatpush2.msra.mxu0 %v350_v6  ;;  %665 = vmatpush2.msra.mxu1 %v626_v32 }
  0xa2   : > { %413 = vmatprep.subr.mxu0 %v349_v8  ;;  %666 = vmatprep.subr.mxu1 %v625_v34  ;;  %v449_v5 = vunpack.c.0.s8 %v448_v3  ;;  %v451_v6 = vshrl.u32 %v450_v4, 7 }
  0xa3   : > { %414 = vmatpush2.msra.mxu0 %v348_v10  ;;  %667 = vmatpush2.msra.mxu1 %v624_v36 }
  0xa4   : > { %415 = vmatprep.subr.mxu0 %v347_v12  ;;  %668 = vmatprep.subr.mxu1 %v623_v38  ;;  %v452_v7 = vsub.s32 %v449_v5, %v451_v6  ;;  %v498_v13 = vsub.s32 0, %v451_v6  ;;  %v440_v38 = vld [vmem:[#allocation7 + $0x10] sm:$0xff] }
  0xa5   : > { %416 = vmatpush2.msra.mxu0 %v346_v14  ;;  %669 = vmatpush2.msra.mxu1 %v622_v40 }
  0xa6   : > { %417 = vmatprep.subr.mxu0 %v345_v16  ;;  %670 = vmatprep.subr.mxu1 %v621_v42 }
  0xa7   : > { %418 = vmatpush2.msra.mxu0 %v344_v18  ;;  %671 = vmatpush2.msra.mxu1 %v620_v44 }
  0xa8   : > { %419 = vmatprep.subr.mxu0 %v343_v20  ;;  %672 = vmatprep.subr.mxu1 %v619_v45  ;;  %v441_v45 = vld [vmem:[#allocation7 + $0x18] sm:$0xff] }
  0xa9   : > { %420 = vmatpush2.msra.mxu0 %v342_v22  ;;  %673 = vmatpush2.msra.mxu1 %v618_v46  ;;  %v439_v22 = vld [vmem:[#allocation7 + $0x8] sm:$0xff]  ;;  %v445_v46 = vld [vmem:[#allocation8 + $0x18] sm:$0xff] }
  0xaa   : > { %421 = vmatprep.subr.mxu0 %v341_v25  ;;  %674 = vmatprep.subr.mxu1 %v617_v47 }
  0xab   : > { %422 = vmatpush2.msra.mxu0 %v340_v27  ;;  %675 = vmatpush2.msra.mxu1 %v616_v48 }
  0xac   : > { %423 = vmatprep.subr.mxu0 %v339_v29  ;;  %676 = vmatprep.subr.mxu1 %v615_v49 }
  0xad   : > { %424 = vmatpush2.msra.mxu0 %v338_v31  ;;  %677 = vmatpush2.msra.mxu1 %v614_v50 }
  0xae   : > { %425 = vmatprep.subr.mxu0 %v337_v33  ;;  %678 = vmatprep.subr.mxu1 %v613_v51 }
  0xaf   : > { %426 = vmatpush2.msra.mxu0 %v336_v35  ;;  %679 = vmatpush2.msra.mxu1 %v612_v52 }
  0xb0   : > { %427 = vmatprep.subr.mxu0 %v335_v37  ;;  %680 = vmatprep.subr.mxu1 %v611_v53 }
  0xb1   : > { %428 = vmatpush2.msra.mxu0 %v334_v39  ;;  %681 = vmatpush2.msra.mxu1 %v610_v54  ;;  %v444_v39 = vld [vmem:[#allocation8 + $0x10] sm:$0xff] }
  0xb2   : > { %429 = vmatprep.subr.mxu0 %v333_v41 }
  0xb3   : > { %430 = vmatpush2.msra.mxu0 %v332_v43 }
  0xb4   : > { %432 = vmatmul.mubr.f32.vlgmr.msra.gmra.mxu0 %v1363_v24  ;;  %v609_v24 = vld [vmem:[#allocation10 + $0x158] sm:$0xff] }
  0xb5   : > { %682 = vmatprep.subr.mxu1 %v609_v24 }
  0xb6   : > { %683 = vmatpush2.msra.mxu1 %v608_v55 }
  0xb7   : > { %684 = vmatprep.subr.mxu1 %v607_v56 }
  0xb8   : > { %685 = vmatpush2.msra.mxu1 %v606_v57 }
  0xb9   : > { %686 = vmatprep.subr.mxu1 %v605_v58 }
  0xba   : > { %687 = vmatpush2.msra.mxu1 %v604_v59 }
  0xbb   : > { %688 = vmatprep.subr.mxu1 %v603_v60 }
  0xbc   : > { %689 = vmatpush2.msra.mxu1 %v602_v61 }
  0xbd   : > { %690 = vmatprep.subr.mxu1 %v601_v62 }
  0xbe   : > { %691 = vmatpush2.msra.mxu1 %v600_v63 }
  0xbf   : > { %692 = vmatprep.subr.mxu1 %v599_v0 }
  0xc0   : > { %693 = vmatpush2.msra.mxu1 %v598_v1 }
 0x174   : > { %v433_v8 = vpop.f32.mrf.mxu0 }
 0x175   : > { %v453_v9 = vrot.slane %v433_v8, %v452_v7 }
 0x176   : > { %v435_v10 = vpop.f32.mrf.mxu0 }
 0x177   : > { %v454_v11 = vcombine.high %v453_v9, %v453_v9  ;;  %v461_v12 = vrot.slane %v453_v9, %v452_v7  ;;  %v478_v14 = vrot.slane %v435_v10, %v452_v7 }
 0x179   : > { %v468_v15 = vrot.slane %v454_v11, %v452_v7  ;;  %v469_v16 = vcombine.high %v461_v12, %v461_v12  ;;  %v479_v17 = vcombine.high %v478_v14, %v478_v14  ;;  %v486_v18 = vrot.slane %v478_v14, %v452_v7 }
 0x17a   : > { %v499_v19 = vrot.slane %v461_v12, %v498_v13 }
 0x17b   : > { %v503_v20 = vrot.slane %v468_v15, %v498_v13  ;;  %v470_v23 = vcombine.high %v468_v15, %v468_v15  ;;  %v493_v25 = vrot.slane %v479_v17, %v452_v7  ;;  %v494_v26 = vcombine.high %v486_v18, %v486_v18 }
 0x17c   : > { %v523_v27 = vrot.slane %v486_v18, %v498_v13  ;;  %v507_v29 = vrot.slane %v469_v16, %v498_v13  ;;  %v516_v35 = vmul.f32 %v499_v19, %v438_v21  ;;  %v551_v44 = vmul.f32 %v499_v19, %v442_v28 }
 0x17d   : > { %v495_v31 = vcombine.high %v493_v25, %v493_v25  ;;  %v527_v32 = vrot.slane %v493_v25, %v498_v13  ;;  %v531_v33 = vrot.slane %v494_v26, %v498_v13  ;;  %v517_v36 = vmul.f32 %v503_v20, %v439_v22 }
 0x17e   : > { %v540_v34 = vmul.f32 %v523_v27, %v442_v28  ;;  %v555_v37 = vmul.f32 %v523_v27, %v438_v21  ;;  %v511_v41 = vrot.slane %v470_v23, %v498_v13  ;;  %v552_v47 = vmul.f32 %v503_v20, %v443_v30 }
 0x17f   : > { %v541_v40 = vmul.f32 %v527_v32, %v443_v30  ;;  %v535_v42 = vrot.slane %v495_v31, %v498_v13  ;;  %v542_v43 = vmul.f32 %v531_v33, %v444_v39  ;;  %v556_v48 = vmul.f32 %v527_v32, %v439_v22 }
 0x180   : > { %v557_v49 = vmul.f32 %v531_v33, %v440_v38  ;;  %v544_v50 = vsub.f32 %v516_v35, %v540_v34  ;;  %v518_v51 = vmul.f32 %v507_v29, %v440_v38  ;;  %v553_v54 = vmul.f32 %v507_v29, %v444_v39 }
 0x181   : > { %v543_v52 = vmul.f32 %v535_v42, %v445_v46  ;;  %v545_v53 = vsub.f32 %v517_v36, %v541_v40  ;;  %v558_v24 = vmul.f32 %v535_v42, %v441_v45  ;;  %v559_v55 = vadd.f32 %v555_v37, %v551_v44 }
 0x182   : > { %v560_v56 = vadd.f32 %v556_v48, %v552_v47  ;;  %v519_v57 = vmul.f32 %v511_v41, %v441_v45  ;;  %v546_v58 = vsub.f32 %v518_v51, %v542_v43  ;;  %v554_v60 = vmul.f32 %v511_v41, %v445_v46 }
 0x183   : > { %v548_v59 = vadd.f32 %v545_v53, %v544_v50  ;;  %v561_v61 = vadd.f32 %v557_v49, %v553_v54 }
 0x184   : > { %v563_v62 = vadd.f32 %v560_v56, %v559_v55  ;;  %v547_v63 = vsub.f32 %v519_v57, %v543_v52  ;;  %v562_v1 = vadd.f32 %v558_v24, %v554_v60 }
 0x185   : > { %v549_v0 = vadd.f32 %v548_v59, %v546_v58 }
 0x186   : > { %v564_v2 = vadd.f32 %v563_v62, %v561_v61 }
 0x187   : > { %v550_v3 = vadd.f32 %v549_v0, %v547_v63 }
 0x188   : > { %v565_v4 = vadd.f32 %v564_v2, %v562_v1 }
 0x18a   : > { %694 = vmatprep.mubr.f32.mxu1 %v565_v4 }
 0x18b   : > { %695 = vmatmul.mubr.f32.vlgmr.msra.gmra.mxu1 %v550_v3 }
 0x24b   : > { %v696_v5 = vpop.f32.mrf.mxu1 }
 0x24c   : > { %701 = vst [vmem:[%s298_s7] sm:$0xff] %v696_v5 }
 0x24d   : > { %v698_v6 = vpop.f32.mrf.mxu1 }
 0x24e   : > { %702 = vst [vmem:[%s298_s7 + $0x8] sm:$0xff] %v698_v6 }
 0x24f   : > { %1088 = shalt.err (!%p1085_p11)
}
 0x250   : > { %s1089_s27 = scalar_lea.hbm %s716_s15, 256  ;;  %s1093_s10 = scalar_lea.hbm %s1415_s5, 512 }
 0x251   : > { %p1090_p13 = scmp.ne.s32.totalorder %s716_s15, %s1089_s27  ;;  %p1094_p4 = scmp.lt.s32.totalorder %s716_s15, %s1415_s5 }
 0x252   : > { %p1095_p6 = scmp.lt.s32.totalorder %s1093_s10, %s1089_s27 }
 0x253   : > { %p1091_p1 = pnand %p1090_p13, %p1433_p7 }
 0x254   : > { %p1096_p2 = por %p1095_p6, %p1094_p4 }
 0x255   : > { %p1092_p3 = pneg %p1091_p1 }
 0x257   : > { %p1097_p8 = pnand %p1096_p2, %p1092_p3 }
 0x259   : > { %1100 = shalt.err (!%p1097_p8)
}
 0x25a   : > { %868 = dma.vmem_to_hbm [thread:$0]  (%p1433_p7), %s1370_s23, 256, %s716_s15, %s704_s17  }
 0x25b PF: > { %s730_s7 = sand.u32 1, %s1135_s18   ;;  %p1434_p10 = scmp.ne.s32.totalorder %s1425_s14, 0 }
 0x25c   : > { %p1435_p0 = scmp.ge.s32.totalorder %s1147_s21, 2  ;;  %s731_s28 = scalar_lea.sflag [#allocation4], %s730_s7 }
 0x25e   : > { %p888_p12 = pnand %p1435_p0, %p1434_p10 }
 0x260   : > { %p889_p5 = pneg %p888_p12 }
 0x262   : > { %1130 = dma.done.wait (%p889_p5), %s731_s28, 256  }
 0x263   : > { %1132 = vsyncadd (%p889_p5), %s731_s28, 4294967040  ;;  %p20_p9 = scmp.ge.s32.totalorder %s1281_s6, 4   ;;  %s1436_s18 = smov %s1139_s19 }
 0x264   : > { %s1437_s19 = smov %s1143_s20  ;;  %s1438_s20 = smov %s1292_s11 }
 0x265   : > { %s1439_s21 = smov %s1281_s6  ;;  %22 = sbr.rel (!%p20_p9) target bundleno = 7 (0x7), region = 101 }
 0x26a   :  { %736 = vsyncpa [#allocation3], 1 }
 0x26b   :  { %738 = vsyncpa [#allocation3 + $0x1], 1 }
 0x26c   :  { %739 = vsyncpa [#allocation6], 1 }
 0x26d   :  { %740 = vsyncpa [#allocation9], 1 }
 0x26e   :  { %741 = vsyncpa [#allocation4], 1 }
 0x26f   :  { %743 = vsyncpa [#allocation4 + $0x1], 1 }

</bundles_post_ra>
